<compile_context>
chip_gen: v7x
topology: tpu7x:2x2x1
jax: 0.10.0
libtpu: 0.0.40
codegen_flags: <defaults>
</compile_context>

<pallas_src>
import functools

import jax
import jax.numpy as jnp
from jax.experimental import pallas as pl
from jax.experimental.pallas import tpu as pltpu


_LANE = 128
_ROW_TILE_CAP = 2048                  # row tile cap (amortize per-step overhead)
_K_TILE_CAP = 512                     # contraction tile cap
_X_RESIDENT_BYTES = 8 * 1024 * 1024   # keep x VMEM-resident below this (single copy)
_VMEM_CAP = 48 * 1024 * 1024          # never request more than this scoped VMEM


def _round_up(x, m):
    return ((x + m - 1) // m) * m


def _cdiv(a, b):
    return -(-a // b)


def _pick_k_tile(n, cap=_K_TILE_CAP):
    """Lane-aligned contraction tile <= cap with bounded padding waste."""
    n_al = _round_up(n, _LANE)
    if n_al <= cap:
        return n_al
    n_tiles = _cdiv(n_al, cap)
    return _round_up(_cdiv(n_al, n_tiles), _LANE)


def _axis_tiles(n):
    """(row_tile, k_tile, padded_n); row_tile is a multiple of k_tile."""
    tk = _pick_k_tile(n)
    nk = _round_up(n, tk) // tk            # number of k tiles
    g_max = max(1, _ROW_TILE_CAP // tk)    # k tiles per row tile
    n_row_tiles = _cdiv(nk, g_max)
    g = _cdiv(nk, n_row_tiles)
    tr = g * tk
    return tr, tk, n_row_tiles * tr


def _pad2d(x, rows, cols):
    r, c = x.shape
    if r == rows and c == cols:
        return x
    return jnp.pad(x, ((0, rows - r), (0, cols - c)))


def _load_x(x_ref, tile_k, x_resident):
    if x_resident:
        start = pl.multiple_of(pl.program_id(1) * tile_k, tile_k)
        return x_ref[pl.ds(start, tile_k), :]
    return x_ref[...]


def _mm_kernel(a_ref, x_ref, o_ref, acc_ref, *, tile_k, x_resident):
    """o = A @ x, accumulated over the K grid axis."""
    @pl.when(pl.program_id(1) == 0)
    def _():
        acc_ref[...] = jnp.zeros_like(acc_ref)

    acc_ref[...] += jnp.dot(a_ref[...], _load_x(x_ref, tile_k, x_resident),
                            preferred_element_type=jnp.float32)

    @pl.when(pl.program_id(1) == pl.num_programs(1) - 1)
    def _():
        o_ref[...] = acc_ref[...].astype(o_ref.dtype)


def _mm_carry_kernel(a_ref, x_ref, c_ref, cur_ref, sum_ref, acc_ref, *,
                     tile_k, x_resident, scale):
    """cur = bf16(A @ x) ; sum = (carry + A @ x) * scale   (fused layer mean)."""
    @pl.when(pl.program_id(1) == 0)
    def _():
        acc_ref[...] = jnp.zeros_like(acc_ref)

    acc_ref[...] += jnp.dot(a_ref[...], _load_x(x_ref, tile_k, x_resident),
                            preferred_element_type=jnp.float32)

    @pl.when(pl.program_id(1) == pl.num_programs(1) - 1)
    def _():
        res = acc_ref[...]
        cur_ref[...] = res.astype(cur_ref.dtype)
        sum_ref[...] = (c_ref[...] + res) * jnp.float32(scale)


def _tiled_matmul(adj_p, x_p, tile_r, tile_k, *, out_dtype=jnp.bfloat16,
                  carry_p=None, scale=1.0):
    """adj_p: (Mp, Kp), x_p: (Kp, Dp) bf16 -> (Mp, Dp) [, running sum f32]."""
    Mp, Kp = adj_p.shape
    Kp2, Dp = x_p.shape
    assert Kp == Kp2 and Mp % tile_r == 0 and Kp % tile_k == 0 and Dp % _LANE == 0

    adj_item = jnp.dtype(adj_p.dtype).itemsize
    x_item = jnp.dtype(x_p.dtype).itemsize
    out_item = jnp.dtype(out_dtype).itemsize

    # Keep x fully VMEM-resident (fetched once) when it is small enough.
    x_resident = Kp * Dp * x_item <= _X_RESIDENT_BYTES

    grid = (Mp // tile_r, Kp // tile_k)
    a_spec = pl.BlockSpec((tile_r, tile_k), lambda i, k: (i, k))
    if x_resident:
        x_spec = pl.BlockSpec((Kp, Dp), lambda i, k: (0, 0))
    else:
        x_spec = pl.BlockSpec((tile_k, Dp), lambda i, k: (k, 0))
    o_spec = pl.BlockSpec((tile_r, Dp), lambda i, k: (i, 0))

    # Actual HBM traffic for x (re-streamed per row tile unless resident).
    x_hbm_bytes = Kp * Dp * x_item if x_resident else (Mp // tile_r) * Kp * Dp * x_item
    flops = 2 * Mp * Kp * Dp

    # VMEM footprint (double-buffered inputs/outputs + f32 accumulator).
    vmem_need = (2 * tile_r * tile_k * adj_item
                 + (2 * Kp * Dp * x_item if x_resident else 2 * tile_k * Dp * x_item)
                 + tile_r * Dp * 4)

    if carry_p is None:
        vmem_need += 2 * tile_r * Dp * out_item
        vmem_limit = min(max(int(1.5 * vmem_need) + (8 << 20), 16 << 20), _VMEM_CAP)
        return pl.pallas_call(
            functools.partial(_mm_kernel, tile_k=tile_k, x_resident=x_resident),
            out_shape=jax.ShapeDtypeStruct((Mp, Dp), out_dtype),
            grid=grid,
            in_specs=[a_spec, x_spec],
            out_specs=o_spec,
            scratch_shapes=[pltpu.VMEM((tile_r, Dp), jnp.float32)],
            compiler_params=pltpu.CompilerParams(
                dimension_semantics=("parallel", "arbitrary"),
                vmem_limit_bytes=vmem_limit),
            cost_estimate=pl.CostEstimate(
                flops=flops, transcendentals=0,
                bytes_accessed=Mp * Kp * adj_item + x_hbm_bytes + Mp * Dp * out_item),
        )(adj_p, x_p)

    assert carry_p.shape == (Mp, Dp) and carry_p.dtype == jnp.float32
    vmem_need += 2 * tile_r * Dp * (4 + out_item + 4)   # carry in + cur out + sum out
    vmem_limit = min(max(int(1.5 * vmem_need) + (8 << 20), 16 << 20), _VMEM_CAP)
    kernel = functools.partial(_mm_carry_kernel, tile_k=tile_k,
                               x_resident=x_resident, scale=scale)
    return pl.pallas_call(
        kernel,
        out_shape=(jax.ShapeDtypeStruct((Mp, Dp), out_dtype),     # cur (bf16)
                   jax.ShapeDtypeStruct((Mp, Dp), jnp.float32)),  # running layer sum
        grid=grid,
        in_specs=[a_spec, x_spec, o_spec],
        out_specs=(o_spec, o_spec),
        scratch_shapes=[pltpu.VMEM((tile_r, Dp), jnp.float32)],
        input_output_aliases={2: 1},        # carry input aliases the sum output
        compiler_params=pltpu.CompilerParams(
            dimension_semantics=("parallel", "arbitrary"),
            vmem_limit_bytes=vmem_limit),
        cost_estimate=pl.CostEstimate(
            flops=flops, transcendentals=0,
            bytes_accessed=(Mp * Kp * adj_item + x_hbm_bytes
                            + Mp * Dp * (out_item + 4 + 4))),
    )(adj_p, x_p, carry_p)


def hcf_propagate(adj1, adj2, emb, n_layers, adj_dtype=jnp.bfloat16):
    """mean_{l=0..L} (A1 A2)^l @ emb, computed with tiled Pallas matmuls."""
    N, D = emb.shape
    E = adj1.shape[1]
    assert adj1.shape == (N, E) and adj2.shape == (E, N)

    if n_layers == 0:
        return emb.astype(jnp.float32)

    tr_n, tk_n, Np = _axis_tiles(N)
    tr_e, tk_e, Ep = _axis_tiles(E)
    Dp = _round_up(D, _LANE)

    adj1_p = _pad2d(adj1.astype(adj_dtype), Np, Ep)      # (Np, Ep)  bf16
    adj2_p = _pad2d(adj2.astype(adj_dtype), Ep, Np)      # (Ep, Np)  bf16
    emb_f32 = _pad2d(emb.astype(jnp.float32), Np, Dp)    # (Np, Dp)  f32 (layer sum)
    cur = emb_f32.astype(jnp.bfloat16)                   # bf16 propagation path

    acc = emb_f32                                        # running sum starts at e0
    inv = 1.0 / float(n_layers + 1)
    for l in range(n_layers):
        t = _tiled_matmul(adj2_p, cur, tr_e, tk_n)       # (Ep, Dp) bf16
        scale = inv if l == n_layers - 1 else 1.0
        cur, acc = _tiled_matmul(adj1_p, t, tr_n, tk_e,
                                 carry_p=acc, scale=scale)  # (Np, Dp) bf16, f32
    return acc[:N, :D]


@functools.partial(jax.jit, static_argnames=("n_layers",))
def hcf_forward(user_emb, item_emb, adj_u1, adj_u2, adj_i1, adj_i2, *, n_layers):
    u_emb = hcf_propagate(adj_u1, adj_u2, user_emb, n_layers)
    i_emb = hcf_propagate(adj_i1, adj_i2, item_emb, n_layers)
    return u_emb, i_emb


def xavier_uniform(key, shape, dtype=jnp.float32):
    fan_in, fan_out = shape[1], shape[0]  # nn.Embedding weight: (num, dim)
    limit = jnp.sqrt(6.0 / (fan_in + fan_out))
    return jax.random.uniform(key, shape, dtype, minval=-limit, maxval=limit)


def _reference_f32(emb, a1, a2, n_layers):
    embs = [emb]
    for _ in range(n_layers):
        embs.append(a1 @ (a2 @ embs[-1]))
    return jnp.mean(jnp.stack(embs, axis=1), axis=1)


def _reference_bf16(emb, a1, a2, n_layers):
    """Mirrors the kernel's bf16 quantization points exactly (accum stays f32)."""
    q = lambda v: v.astype(jnp.bfloat16)
    a1q, a2q = q(a1), q(a2)
    cur = q(emb)
    s = emb.astype(jnp.float32)
    for _ in range(n_layers):
        t = q(jnp.dot(a2q, cur, preferred_element_type=jnp.float32))
        res = jnp.dot(a1q, t, preferred_element_type=jnp.float32)
        s = s + res
        cur = q(res)
    return s / float(n_layers + 1)


if __name__ == "__main__":
    # Small, deterministic config.
    n_users, n_items = 16, 24
    n_uedges, n_iedges = 8, 16          # hyperedge counts
    embedding_dim = 32
    layer_num = 2
    # dropout_list exists in __init__ but dropout is never applied in forward().

    key = jax.random.PRNGKey(0)
    k_ue, k_ie, k_au, k_ai = jax.random.split(key, 4)

    user_embedding = xavier_uniform(k_ue, (n_users, embedding_dim))
    item_embedding = xavier_uniform(k_ie, (n_items, embedding_dim))

    # Deterministic dense stand-ins for the sparse adjacency / incidence matrices.
    def make_adj(k, rows, cols):
        m = (jax.random.uniform(k, (rows, cols)) < 0.3).astype(jnp.float32)
        denom = jnp.maximum(m.sum(axis=1, keepdims=True), 1.0)   # row-normalize
        return m / denom

    ku1, ku2 = jax.random.split(k_au)
    ki1, ki2 = jax.random.split(k_ai)
    adj_u1 = make_adj(ku1, n_users, n_uedges)   # (n_users, E_u)
    adj_u2 = make_adj(ku2, n_uedges, n_users)   # (E_u, n_users)
    adj_i1 = make_adj(ki1, n_items, n_iedges)   # (n_items, E_i)
    adj_i2 = make_adj(ki2, n_iedges, n_items)   # (E_i, n_items)

    u_emb, i_emb = hcf_forward(
        user_embedding, item_embedding, adj_u1, adj_u2, adj_i1, adj_i2,
        n_layers=layer_num,
    )
    jax.block_until_ready((u_emb, i_emb))

    assert u_emb.shape == (n_users, embedding_dim)
    assert i_emb.shape == (n_items, embedding_dim)

    # Tight check: reference with the kernel's exact bf16 quantization points
    # (bf16 adjacency, bf16 propagation path, f32 accumulation / layer sum).
    u_ref_q = _reference_bf16(user_embedding, adj_u1, adj_u2, layer_num)
    i_ref_q = _reference_bf16(item_embedding, adj_i1, adj_i2, layer_num)
    assert jnp.allclose(u_emb, u_ref_q, atol=1e-4, rtol=1e-4)
    assert jnp.allclose(i_emb, i_ref_q, atol=1e-4, rtol=1e-4)

    # Looser check vs the full-f32 module semantics (bounded by bf16 quantization).
    u_ref = _reference_f32(user_embedding, adj_u1, adj_u2, layer_num)
    i_ref = _reference_f32(item_embedding, adj_i1, adj_i2, layer_num)
    assert jnp.allclose(u_emb, u_ref, atol=2e-2, rtol=2e-2)
    assert jnp.allclose(i_emb, i_ref, atol=2e-2, rtol=2e-2)

    print("KERNEL_OK")
</pallas_src>

<mosaic_0001>
module attributes {stable_mosaic.version = 11 : i64} {
  func.func @_mm_kernel(%arg0: i32, %arg1: i32, %arg2: memref<128x128xbf16, #tpu.memory_space<vmem>>, %arg3: memref<128x128xbf16, #tpu.memory_space<vmem>>, %arg4: memref<128x128xbf16, #tpu.memory_space<vmem>>, %arg5: memref<128x128xf32, #tpu.memory_space<vmem>>) attributes {dimension_semantics = [#tpu.dimension_semantics<parallel>, #tpu.dimension_semantics<arbitrary>], iteration_bounds = array<i64: 1, 1>, scalar_prefetch = 0 : i64, scratch_operands = 1 : i64, tpu.core_type = #tpu.core_type<tc>, window_params = [{transform_indices = @transform_0, window_bounds = array<i64: 128, 128>}, {pipeline_mode = #tpu.pipeline_mode<synchronous>, transform_indices = @transform_1, window_bounds = array<i64: 128, 128>}, {transform_indices = @transform_2, window_bounds = array<i64: 128, 128>}]} {
    %c0_i32 = arith.constant 0 : i32
    %0 = arith.cmpi eq, %arg1, %c0_i32 : i32
    %1 = arith.extui %0 : i1 to i32
    %c0_i32_0 = arith.constant 0 : i32
    %2 = arith.cmpi ne, %1, %c0_i32_0 : i32
    scf.if %2 {
      %cst_9 = arith.constant 0.000000e+00 : f32
      %15 = vector.broadcast %cst_9 : f32 to vector<128x128xf32>
      %c0_10 = arith.constant 0 : index
      %c0_11 = arith.constant 0 : index
      %16 = vector.load %arg5[%c0_10, %c0_11] : memref<128x128xf32, #tpu.memory_space<vmem>>, vector<128x128xf32>
      tpu.vector_store %arg5[%c0_10, %c0_11], %15 {strides = array<i32>} : memref<128x128xf32, #tpu.memory_space<vmem>>, vector<128x128xf32>,
    } else {
    }
    %c0 = arith.constant 0 : index
    %c0_1 = arith.constant 0 : index
    %3 = vector.load %arg5[%c0, %c0_1] : memref<128x128xf32, #tpu.memory_space<vmem>>, vector<128x128xf32>
    %c0_2 = arith.constant 0 : index
    %c0_3 = arith.constant 0 : index
    %4 = vector.load %arg2[%c0_2, %c0_3] : memref<128x128xbf16, #tpu.memory_space<vmem>>, vector<128x128xbf16>
    %c128_i32 = arith.constant 128 : i32
    %5 = arith.muli %arg1, %c128_i32 : i32
    %6 = tpu.assume_multiple %5, 128 : i32
    %7 = arith.index_cast %6 : i32 to index
    %c0_4 = arith.constant 0 : index
    %8 = vector.load %arg3[%7, %c0_4] : memref<128x128xbf16, #tpu.memory_space<vmem>>, vector<128x128xbf16>
    %cst = arith.constant dense<0.000000e+00> : vector<128x128xf32>
    %9 = tpu.matmul %4, %8, %cst {dimension_numbers = #tpu.dot_dimension_numbers<[1], [0], [0], [1], [0, 0, 1, 1], [], []>} : vector<128x128xbf16>, vector<128x128xbf16>, vector<128x128xf32> -> vector<128x128xf32>
    %10 = arith.addf %3, %9 : vector<128x128xf32>
    %c0_5 = arith.constant 0 : index
    %c0_6 = arith.constant 0 : index
    %11 = vector.load %arg5[%c0_5, %c0_6] : memref<128x128xf32, #tpu.memory_space<vmem>>, vector<128x128xf32>
    tpu.vector_store %arg5[%c0_5, %c0_6], %10 {strides = array<i32>} : memref<128x128xf32, #tpu.memory_space<vmem>>, vector<128x128xf32>,
    %c0_i32_7 = arith.constant 0 : i32
    %12 = arith.cmpi eq, %arg1, %c0_i32_7 : i32
    %13 = arith.extui %12 : i1 to i32
    %c0_i32_8 = arith.constant 0 : i32
    %14 = arith.cmpi ne, %13, %c0_i32_8 : i32
    scf.if %14 {
      %c0_9 = arith.constant 0 : index
      %c0_10 = arith.constant 0 : index
      %15 = vector.load %arg5[%c0_9, %c0_10] : memref<128x128xf32, #tpu.memory_space<vmem>>, vector<128x128xf32>
      %16 = arith.truncf %15 : vector<128x128xf32> to vector<128x128xbf16>
      %c0_11 = arith.constant 0 : index
      %c0_12 = arith.constant 0 : index
      %17 = vector.load %arg4[%c0_11, %c0_12] : memref<128x128xbf16, #tpu.memory_space<vmem>>, vector<128x128xbf16>
      tpu.vector_store %arg4[%c0_11, %c0_12], %16 {strides = array<i32>} : memref<128x128xbf16, #tpu.memory_space<vmem>>, vector<128x128xbf16>,
    } else {
    }
    return
  }
  func.func @transform_0(%arg0: i32, %arg1: i32) -> (i32, i32) {
    %c0_i32 = arith.constant 0 : i32
    return %arg0, %arg1 : i32, i32
  }
  func.func @transform_1(%arg0: i32, %arg1: i32) -> (i32, i32) {
    %c0_i32 = arith.constant 0 : i32
    %c0_i32_0 = arith.constant 0 : i32
    %c0_i32_1 = arith.constant 0 : i32
    return %c0_i32, %c0_i32_0 : i32, i32
  }
  func.func @transform_2(%arg0: i32, %arg1: i32) -> (i32, i32) {
    %c0_i32 = arith.constant 0 : i32
    %c0_i32_0 = arith.constant 0 : i32
    return %arg0, %c0_i32 : i32, i32
  }
}

module attributes {stable_mosaic.version = 11 : i64} {
  func.func @_mm_carry_kernel(%arg0: i32, %arg1: i32, %arg2: memref<128x128xbf16, #tpu.memory_space<vmem>>, %arg3: memref<128x128xbf16, #tpu.memory_space<vmem>>, %arg4: memref<128x128xf32, #tpu.memory_space<vmem>>, %arg5: memref<128x128xbf16, #tpu.memory_space<vmem>>, %arg6: memref<128x128xf32, #tpu.memory_space<vmem>>, %arg7: memref<128x128xf32, #tpu.memory_space<vmem>>) attributes {dimension_semantics = [#tpu.dimension_semantics<parallel>, #tpu.dimension_semantics<arbitrary>], iteration_bounds = array<i64: 1, 1>, scalar_prefetch = 0 : i64, scratch_operands = 1 : i64, tpu.core_type = #tpu.core_type<tc>, window_params = [{transform_indices = @transform_0, window_bounds = array<i64: 128, 128>}, {pipeline_mode = #tpu.pipeline_mode<synchronous>, transform_indices = @transform_1, window_bounds = array<i64: 128, 128>}, {transform_indices = @transform_2, window_bounds = array<i64: 128, 128>}, {transform_indices = @transform_3, window_bounds = array<i64: 128, 128>}, {transform_indices = @transform_4, window_bounds = array<i64: 128, 128>}]} {
    %c0_i32 = arith.constant 0 : i32
    %0 = arith.cmpi eq, %arg1, %c0_i32 : i32
    %1 = arith.extui %0 : i1 to i32
    %c0_i32_0 = arith.constant 0 : i32
    %2 = arith.cmpi ne, %1, %c0_i32_0 : i32
    scf.if %2 {
      %cst_9 = arith.constant 0.000000e+00 : f32
      %15 = vector.broadcast %cst_9 : f32 to vector<128x128xf32>
      %c0_10 = arith.constant 0 : index
      %c0_11 = arith.constant 0 : index
      %16 = vector.load %arg7[%c0_10, %c0_11] : memref<128x128xf32, #tpu.memory_space<vmem>>, vector<128x128xf32>
      tpu.vector_store %arg7[%c0_10, %c0_11], %15 {strides = array<i32>} : memref<128x128xf32, #tpu.memory_space<vmem>>, vector<128x128xf32>,
    } else {
    }
    %c0 = arith.constant 0 : index
    %c0_1 = arith.constant 0 : index
    %3 = vector.load %arg7[%c0, %c0_1] : memref<128x128xf32, #tpu.memory_space<vmem>>, vector<128x128xf32>
    %c0_2 = arith.constant 0 : index
    %c0_3 = arith.constant 0 : index
    %4 = vector.load %arg2[%c0_2, %c0_3] : memref<128x128xbf16, #tpu.memory_space<vmem>>, vector<128x128xbf16>
    %c128_i32 = arith.constant 128 : i32
    %5 = arith.muli %arg1, %c128_i32 : i32
    %6 = tpu.assume_multiple %5, 128 : i32
    %7 = arith.index_cast %6 : i32 to index
    %c0_4 = arith.constant 0 : index
    %8 = vector.load %arg3[%7, %c0_4] : memref<128x128xbf16, #tpu.memory_space<vmem>>, vector<128x128xbf16>
    %cst = arith.constant dense<0.000000e+00> : vector<128x128xf32>
    %9 = tpu.matmul %4, %8, %cst {dimension_numbers = #tpu.dot_dimension_numbers<[1], [0], [0], [1], [0, 0, 1, 1], [], []>} : vector<128x128xbf16>, vector<128x128xbf16>, vector<128x128xf32> -> vector<128x128xf32>
    %10 = arith.addf %3, %9 : vector<128x128xf32>
    %c0_5 = arith.constant 0 : index
    %c0_6 = arith.constant 0 : index
    %11 = vector.load %arg7[%c0_5, %c0_6] : memref<128x128xf32, #tpu.memory_space<vmem>>, vector<128x128xf32>
    tpu.vector_store %arg7[%c0_5, %c0_6], %10 {strides = array<i32>} : memref<128x128xf32, #tpu.memory_space<vmem>>, vector<128x128xf32>,
    %c0_i32_7 = arith.constant 0 : i32
    %12 = arith.cmpi eq, %arg1, %c0_i32_7 : i32
    %13 = arith.extui %12 : i1 to i32
    %c0_i32_8 = arith.constant 0 : i32
    %14 = arith.cmpi ne, %13, %c0_i32_8 : i32
    scf.if %14 {
      %c0_9 = arith.constant 0 : index
      %c0_10 = arith.constant 0 : index
      %15 = vector.load %arg7[%c0_9, %c0_10] : memref<128x128xf32, #tpu.memory_space<vmem>>, vector<128x128xf32>
      %16 = arith.truncf %15 : vector<128x128xf32> to vector<128x128xbf16>
      %c0_11 = arith.constant 0 : index
      %c0_12 = arith.constant 0 : index
      %17 = vector.load %arg5[%c0_11, %c0_12] : memref<128x128xbf16, #tpu.memory_space<vmem>>, vector<128x128xbf16>
      tpu.vector_store %arg5[%c0_11, %c0_12], %16 {strides = array<i32>} : memref<128x128xbf16, #tpu.memory_space<vmem>>, vector<128x128xbf16>,
      %c0_13 = arith.constant 0 : index
      %c0_14 = arith.constant 0 : index
      %18 = vector.load %arg4[%c0_13, %c0_14] : memref<128x128xf32, #tpu.memory_space<vmem>>, vector<128x128xf32>
      %19 = arith.addf %18, %15 : vector<128x128xf32>
      %cst_15 = arith.constant 0.333333343 : f32
      %20 = vector.broadcast %cst_15 : f32 to vector<128x128xf32>
      %21 = arith.mulf %19, %20 : vector<128x128xf32>
      %c0_16 = arith.constant 0 : index
      %c0_17 = arith.constant 0 : index
      %22 = vector.load %arg6[%c0_16, %c0_17] : memref<128x128xf32, #tpu.memory_space<vmem>>, vector<128x128xf32>
      tpu.vector_store %arg6[%c0_16, %c0_17], %21 {strides = array<i32>} : memref<128x128xf32, #tpu.memory_space<vmem>>, vector<128x128xf32>,
    } else {
    }
    return
  }
  func.func @transform_0(%arg0: i32, %arg1: i32) -> (i32, i32) {
    %c0_i32 = arith.constant 0 : i32
    return %arg0, %arg1 : i32, i32
  }
  func.func @transform_1(%arg0: i32, %arg1: i32) -> (i32, i32) {
    %c0_i32 = arith.constant 0 : i32
    %c0_i32_0 = arith.constant 0 : i32
    %c0_i32_1 = arith.constant 0 : i32
    return %c0_i32, %c0_i32_0 : i32, i32
  }
  func.func @transform_2(%arg0: i32, %arg1: i32) -> (i32, i32) {
    %c0_i32 = arith.constant 0 : i32
    %c0_i32_0 = arith.constant 0 : i32
    return %arg0, %c0_i32 : i32, i32
  }
  func.func @transform_3(%arg0: i32, %arg1: i32) -> (i32, i32) {
    %c0_i32 = arith.constant 0 : i32
    %c0_i32_0 = arith.constant 0 : i32
    return %arg0, %c0_i32 : i32, i32
  }
  func.func @transform_4(%arg0: i32, %arg1: i32) -> (i32, i32) {
    %c0_i32 = arith.constant 0 : i32
    %c0_i32_0 = arith.constant 0 : i32
    return %arg0, %c0_i32 : i32, i32
  }
}

module attributes {stable_mosaic.version = 11 : i64} {
  func.func @_mm_carry_kernel(%arg0: i32, %arg1: i32, %arg2: memref<128x128xbf16, #tpu.memory_space<vmem>>, %arg3: memref<128x128xbf16, #tpu.memory_space<vmem>>, %arg4: memref<128x128xf32, #tpu.memory_space<vmem>>, %arg5: memref<128x128xbf16, #tpu.memory_space<vmem>>, %arg6: memref<128x128xf32, #tpu.memory_space<vmem>>, %arg7: memref<128x128xf32, #tpu.memory_space<vmem>>) attributes {dimension_semantics = [#tpu.dimension_semantics<parallel>, #tpu.dimension_semantics<arbitrary>], iteration_bounds = array<i64: 1, 1>, scalar_prefetch = 0 : i64, scratch_operands = 1 : i64, tpu.core_type = #tpu.core_type<tc>, window_params = [{transform_indices = @transform_0, window_bounds = array<i64: 128, 128>}, {pipeline_mode = #tpu.pipeline_mode<synchronous>, transform_indices = @transform_1, window_bounds = array<i64: 128, 128>}, {transform_indices = @transform_2, window_bounds = array<i64: 128, 128>}, {transform_indices = @transform_3, window_bounds = array<i64: 128, 128>}, {transform_indices = @transform_4, window_bounds = array<i64: 128, 128>}]} {
    %c0_i32 = arith.constant 0 : i32
    %0 = arith.cmpi eq, %arg1, %c0_i32 : i32
    %1 = arith.extui %0 : i1 to i32
    %c0_i32_0 = arith.constant 0 : i32
    %2 = arith.cmpi ne, %1, %c0_i32_0 : i32
    scf.if %2 {
      %cst_9 = arith.constant 0.000000e+00 : f32
      %15 = vector.broadcast %cst_9 : f32 to vector<128x128xf32>
      %c0_10 = arith.constant 0 : index
      %c0_11 = arith.constant 0 : index
      %16 = vector.load %arg7[%c0_10, %c0_11] : memref<128x128xf32, #tpu.memory_space<vmem>>, vector<128x128xf32>
      tpu.vector_store %arg7[%c0_10, %c0_11], %15 {strides = array<i32>} : memref<128x128xf32, #tpu.memory_space<vmem>>, vector<128x128xf32>,
    } else {
    }
    %c0 = arith.constant 0 : index
    %c0_1 = arith.constant 0 : index
    %3 = vector.load %arg7[%c0, %c0_1] : memref<128x128xf32, #tpu.memory_space<vmem>>, vector<128x128xf32>
    %c0_2 = arith.constant 0 : index
    %c0_3 = arith.constant 0 : index
    %4 = vector.load %arg2[%c0_2, %c0_3] : memref<128x128xbf16, #tpu.memory_space<vmem>>, vector<128x128xbf16>
    %c128_i32 = arith.constant 128 : i32
    %5 = arith.muli %arg1, %c128_i32 : i32
    %6 = tpu.assume_multiple %5, 128 : i32
    %7 = arith.index_cast %6 : i32 to index
    %c0_4 = arith.constant 0 : index
    %8 = vector.load %arg3[%7, %c0_4] : memref<128x128xbf16, #tpu.memory_space<vmem>>, vector<128x128xbf16>
    %cst = arith.constant dense<0.000000e+00> : vector<128x128xf32>
    %9 = tpu.matmul %4, %8, %cst {dimension_numbers = #tpu.dot_dimension_numbers<[1], [0], [0], [1], [0, 0, 1, 1], [], []>} : vector<128x128xbf16>, vector<128x128xbf16>, vector<128x128xf32> -> vector<128x128xf32>
    %10 = arith.addf %3, %9 : vector<128x128xf32>
    %c0_5 = arith.constant 0 : index
    %c0_6 = arith.constant 0 : index
    %11 = vector.load %arg7[%c0_5, %c0_6] : memref<128x128xf32, #tpu.memory_space<vmem>>, vector<128x128xf32>
    tpu.vector_store %arg7[%c0_5, %c0_6], %10 {strides = array<i32>} : memref<128x128xf32, #tpu.memory_space<vmem>>, vector<128x128xf32>,
    %c0_i32_7 = arith.constant 0 : i32
    %12 = arith.cmpi eq, %arg1, %c0_i32_7 : i32
    %13 = arith.extui %12 : i1 to i32
    %c0_i32_8 = arith.constant 0 : i32
    %14 = arith.cmpi ne, %13, %c0_i32_8 : i32
    scf.if %14 {
      %c0_9 = arith.constant 0 : index
      %c0_10 = arith.constant 0 : index
      %15 = vector.load %arg7[%c0_9, %c0_10] : memref<128x128xf32, #tpu.memory_space<vmem>>, vector<128x128xf32>
      %16 = arith.truncf %15 : vector<128x128xf32> to vector<128x128xbf16>
      %c0_11 = arith.constant 0 : index
      %c0_12 = arith.constant 0 : index
      %17 = vector.load %arg5[%c0_11, %c0_12] : memref<128x128xbf16, #tpu.memory_space<vmem>>, vector<128x128xbf16>
      tpu.vector_store %arg5[%c0_11, %c0_12], %16 {strides = array<i32>} : memref<128x128xbf16, #tpu.memory_space<vmem>>, vector<128x128xbf16>,
      %c0_13 = arith.constant 0 : index
      %c0_14 = arith.constant 0 : index
      %18 = vector.load %arg4[%c0_13, %c0_14] : memref<128x128xf32, #tpu.memory_space<vmem>>, vector<128x128xf32>
      %19 = arith.addf %18, %15 : vector<128x128xf32>
      %cst_15 = arith.constant 1.000000e+00 : f32
      %20 = vector.broadcast %cst_15 : f32 to vector<128x128xf32>
      %21 = arith.mulf %19, %20 : vector<128x128xf32>
      %c0_16 = arith.constant 0 : index
      %c0_17 = arith.constant 0 : index
      %22 = vector.load %arg6[%c0_16, %c0_17] : memref<128x128xf32, #tpu.memory_space<vmem>>, vector<128x128xf32>
      tpu.vector_store %arg6[%c0_16, %c0_17], %21 {strides = array<i32>} : memref<128x128xf32, #tpu.memory_space<vmem>>, vector<128x128xf32>,
    } else {
    }
    return
  }
  func.func @transform_0(%arg0: i32, %arg1: i32) -> (i32, i32) {
    %c0_i32 = arith.constant 0 : i32
    return %arg0, %arg1 : i32, i32
  }
  func.func @transform_1(%arg0: i32, %arg1: i32) -> (i32, i32) {
    %c0_i32 = arith.constant 0 : i32
    %c0_i32_0 = arith.constant 0 : i32
    %c0_i32_1 = arith.constant 0 : i32
    return %c0_i32, %c0_i32_0 : i32, i32
  }
  func.func @transform_2(%arg0: i32, %arg1: i32) -> (i32, i32) {
    %c0_i32 = arith.constant 0 : i32
    %c0_i32_0 = arith.constant 0 : i32
    return %arg0, %c0_i32 : i32, i32
  }
  func.func @transform_3(%arg0: i32, %arg1: i32) -> (i32, i32) {
    %c0_i32 = arith.constant 0 : i32
    %c0_i32_0 = arith.constant 0 : i32
    return %arg0, %c0_i32 : i32, i32
  }
  func.func @transform_4(%arg0: i32, %arg1: i32) -> (i32, i32) {
    %c0_i32 = arith.constant 0 : i32
    %c0_i32_0 = arith.constant 0 : i32
    return %arg0, %c0_i32 : i32, i32
  }
}

</mosaic_0001>

<bundles_post_ra>
// kernel: hcf_forward.9
= control target key start
LH: loop header
LB: loop body
LE: loop exit
PB: predicated region body
PF: predicated region fallthrough
CT: control target
= control target key end

     0   :  { %s840_s1 = inlined_call_operand.vmem [shape: bf16[128,128], index: 1, kind: input, shape index: {}]   ;;  %s841_s0 = inlined_call_operand.vmem [shape: bf16[128,128], index: 0, kind: input, shape index: {}]   ;;  %s842_s2 = inlined_call_operand.vmem [shape: f32[128,128], index: 2, kind: input, shape index: {}, may-alias: {2,4}]   ;;  %s843_s4 = inlined_call_operand.vmem [shape: f32[128,128], index: 4, kind: output, shape index: {1}, may-alias: {2,4}]   ;;  %s844_s3 = inlined_call_operand.vmem [shape: bf16[128,128], index: 3, kind: output, shape index: {0}]  }
   0x1   :  { %v631_v0 = vld [vmem:[%s840_s1] sm:$0xff]   ;;  %v632_v1 = vld [vmem:[%s840_s1 + $0x8] sm:$0xff]   ;;  %v633_v2 = vld [vmem:[%s840_s1 + $0x10] sm:$0xff]  }
   0x2   :  { %583 = vmatprep.subr.bf16.mxu0 %v631_v0  ;;  %615 = vmatprep.subr.bf16.mxu1 %v631_v0  ;;  %v634_v3 = vld [vmem:[%s840_s1 + $0x18] sm:$0xff]   ;;  %v639_v4 = vld [vmem:[%s841_s0] sm:$0xff]   ;;  %v636_v7 = vld [vmem:[%s840_s1 + $0x28] sm:$0xff]  }
   0x3   :  { %584 = vmatpush3.bf16.msra.mxu0 %v631_v0  ;;  %623 = vmatpush3.bf16.msra.mxu1 %v631_v0  ;;  %v640_v5 = vld [vmem:[%s841_s0 + $0x20] sm:$0xff]   ;;  %v637_v8 = vld [vmem:[%s840_s1 + $0x30] sm:$0xff]   ;;  %v638_v9 = vld [vmem:[%s840_s1 + $0x38] sm:$0xff]  }
   0x4   :  { %585 = vmatprep.subr.bf16.mxu0 %v632_v1  ;;  %616 = vmatprep.subr.bf16.mxu1 %v632_v1  ;;  %v635_v6 = vld [vmem:[%s840_s1 + $0x20] sm:$0xff]   ;;  %v641_v10 = vld [vmem:[%s841_s0 + $0x8] sm:$0xff]   ;;  %v643_v12 = vld [vmem:[%s841_s0 + $0x10] sm:$0xff]  }
   0x5   :  { %599 = vmatprep.mubr.bf16.mxu0 %v639_v4  ;;  %607 = vmatprep.mubr.bf16.mxu1 %v640_v5  ;;  %v642_v11 = vld [vmem:[%s841_s0 + $0x28] sm:$0xff]   ;;  %v644_v13 = vld [vmem:[%s841_s0 + $0x30] sm:$0xff]   ;;  %v645_v14 = vld [vmem:[%s841_s0 + $0x18] sm:$0xff]  }
   0x6   :  { %v646_v15 = vld [vmem:[%s841_s0 + $0x38] sm:$0xff]   ;;  %v416_v16 = vld [vmem:[%s842_s2 + $0x10] sm:$0xff]  ;;  %v414_v18 = vld [vmem:[%s842_s2] sm:$0xff] }
   0x7   :  { %586 = vmatpush3.bf16.msra.mxu0 %v632_v1  ;;  %624 = vmatpush3.bf16.msra.mxu1 %v632_v1  ;;  %v424_v17 = vld [vmem:[%s842_s2 + $0x50] sm:$0xff]  ;;  %v422_v19 = vld [vmem:[%s842_s2 + $0x40] sm:$0xff]  ;;  %v417_v22 = vld [vmem:[%s842_s2 + $0x18] sm:$0xff] }
   0x8   :  { %587 = vmatprep.subr.bf16.mxu0 %v633_v2  ;;  %617 = vmatprep.subr.bf16.mxu1 %v633_v2  ;;  %v425_v23 = vld [vmem:[%s842_s2 + $0x58] sm:$0xff]  ;;  %v415_v28 = vld [vmem:[%s842_s2 + $0x8] sm:$0xff] }
   0x9   :  { %v423_v29 = vld [vmem:[%s842_s2 + $0x48] sm:$0xff] }
   0xb   :  { %588 = vmatpush3.bf16.msra.mxu0 %v633_v2  ;;  %625 = vmatpush3.bf16.msra.mxu1 %v633_v2 }
   0xc   :  { %589 = vmatprep.subr.bf16.mxu0 %v634_v3  ;;  %618 = vmatprep.subr.bf16.mxu1 %v634_v3 }
   0xf   :  { %590 = vmatpush3.bf16.msra.mxu0 %v634_v3  ;;  %626 = vmatpush3.bf16.msra.mxu1 %v634_v3 }
  0x10   :  { %591 = vmatprep.subr.bf16.mxu0 %v635_v6  ;;  %619 = vmatprep.subr.bf16.mxu1 %v635_v6 }
  0x13   :  { %592 = vmatpush3.bf16.msra.mxu0 %v635_v6  ;;  %627 = vmatpush3.bf16.msra.mxu1 %v635_v6 }
  0x14   :  { %593 = vmatprep.subr.bf16.mxu0 %v636_v7  ;;  %620 = vmatprep.subr.bf16.mxu1 %v636_v7 }
  0x17   :  { %594 = vmatpush3.bf16.msra.mxu0 %v636_v7  ;;  %628 = vmatpush3.bf16.msra.mxu1 %v636_v7 }
  0x18   :  { %595 = vmatprep.subr.bf16.mxu0 %v637_v8  ;;  %621 = vmatprep.subr.bf16.mxu1 %v637_v8 }
  0x1b   :  { %596 = vmatpush3.bf16.msra.mxu0 %v637_v8  ;;  %629 = vmatpush3.bf16.msra.mxu1 %v637_v8 }
  0x1c   :  { %597 = vmatprep.subr.bf16.mxu0 %v638_v9  ;;  %622 = vmatprep.subr.bf16.mxu1 %v638_v9 }
  0x1f   :  { %598 = vmatpush3.bf16.msra.mxu0 %v638_v9  ;;  %630 = vmatpush3.bf16.msra.mxu1 %v638_v9 }
  0x22   :  { %600 = vmatmul.mubr.bf16.vlgmr.msra.gmra.mrb[0].mxu0 %v641_v10  ;;  %608 = vmatmul.mubr.bf16.vlgmr.msra.gmra.mrb[0].mxu1 %v642_v11 }
  0x23   :  { %603 = vmatprep.mubr.bf16.mxu0 %v643_v12  ;;  %611 = vmatprep.mubr.bf16.mxu1 %v644_v13 }
  0x2a   :  { %604 = vmatmul.mubr.bf16.gmra.mrb[4].mxu0 %v645_v14  ;;  %612 = vmatmul.mubr.bf16.gmra.mrb[4].mxu1 %v646_v15 }
  0xf5   :  { %v601_v20 = vpop.f32.mrb[0].mxu0  ;;  %v609_v21 = vpop.f32.mrb[0].mxu1 }
  0xf6   :  { %v432_v24 = vadd.f32 %v601_v20, %v416_v16  ;;  %v440_v25 = vadd.f32 %v609_v21, %v424_v17  ;;  %v220_v26 = vpop.f32.mrb[1].mxu0  ;;  %v252_v27 = vpop.f32.mrb[1].mxu1 }
  0xf7   :  { %v430_v30 = vadd.f32 %v414_v18, %v220_v26  ;;  %v438_v31 = vadd.f32 %v422_v19, %v252_v27  ;;  %v602_v32 = vpop.f32.mrb[2].mxu0  ;;  %v610_v33 = vpop.f32.mrb[2].mxu1 }
  0xf8   :  { %448 = vst [vmem:[%s843_s4 + $0x10] sm:$0xff] %v432_v24  ;;  %456 = vst [vmem:[%s843_s4 + $0x50] sm:$0xff] %v440_v25  ;;  %v528_v34 = vpack.c.bf16 %v602_v32, %v601_v20  ;;  %v433_v35 = vadd.f32 %v602_v32, %v417_v22  ;;  %v548_v36 = vpack.c.bf16 %v610_v33, %v609_v21  ;;  %v223_v38 = vpop.f32.mrb[3].mxu0  ;;  %v255_v39 = vpop.f32.mrb[3].mxu1 }
  0xf9   :  { %v441_v37 = vadd.f32 %v610_v33, %v425_v23  ;;  %446 = vst [vmem:[%s843_s4] sm:$0xff] %v430_v30  ;;  %454 = vst [vmem:[%s843_s4 + $0x40] sm:$0xff] %v438_v31  ;;  %v523_v40 = vpack.c.bf16 %v223_v38, %v220_v26  ;;  %v431_v41 = vadd.f32 %v415_v28, %v223_v38 }
  0xfa   :  { %v543_v42 = vpack.c.bf16 %v255_v39, %v252_v27  ;;  %v439_v43 = vadd.f32 %v423_v29, %v255_v39  ;;  %560 = vst [vmem:[%s844_s3 + $0x8] sm:$0xff] %v528_v34   ;;  %449 = vst [vmem:[%s843_s4 + $0x18] sm:$0xff] %v433_v35 }
  0xfb   :  { %564 = vst [vmem:[%s844_s3 + $0x28] sm:$0xff] %v548_v36   ;;  %457 = vst [vmem:[%s843_s4 + $0x58] sm:$0xff] %v441_v37 }
  0xfc   :  { %524 = vst [vmem:[%s844_s3] sm:$0xff] %v523_v40   ;;  %447 = vst [vmem:[%s843_s4 + $0x8] sm:$0xff] %v431_v41 }
  0xfd   :  { %563 = vst [vmem:[%s844_s3 + $0x20] sm:$0xff] %v543_v42   ;;  %455 = vst [vmem:[%s843_s4 + $0x48] sm:$0xff] %v439_v43  ;;  %v605_v48 = vpop.f32.mrb[4].mxu0  ;;  %v613_v49 = vpop.f32.mrb[4].mxu1 }
  0xfe   :  { %v236_v54 = vpop.f32.mrb[5].mxu0  ;;  %v268_v55 = vpop.f32.mrb[5].mxu1 }
  0xff   :  { %v606_v60 = vpop.f32.mrb[6].mxu0  ;;  %v614_v61 = vpop.f32.mrb[6].mxu1 }
 0x100   :  { %v538_v62 = vpack.c.bf16 %v606_v60, %v605_v48  ;;  %v558_v0 = vpack.c.bf16 %v614_v61, %v613_v49  ;;  %v239_v2 = vpop.f32.mrb[7].mxu0  ;;  %v271_v3 = vpop.f32.mrb[7].mxu1 }
 0x101   :  { %v533_v4 = vpack.c.bf16 %v239_v2, %v236_v54  ;;  %v553_v6 = vpack.c.bf16 %v271_v3, %v268_v55 }
 0x102   :  { %562 = vst [vmem:[%s844_s3 + $0x18] sm:$0xff] %v538_v62   ;;  %566 = vst [vmem:[%s844_s3 + $0x38] sm:$0xff] %v558_v0  }
 0x103   :  { %561 = vst [vmem:[%s844_s3 + $0x10] sm:$0xff] %v533_v4   ;;  %565 = vst [vmem:[%s844_s3 + $0x30] sm:$0xff] %v553_v6  }
 0x104   :  { %v420_v44 = vld [vmem:[%s842_s2 + $0x30] sm:$0xff]  ;;  %v418_v46 = vld [vmem:[%s842_s2 + $0x20] sm:$0xff]  ;;  %v421_v50 = vld [vmem:[%s842_s2 + $0x38] sm:$0xff] }
 0x105   :  { %v428_v45 = vld [vmem:[%s842_s2 + $0x70] sm:$0xff]  ;;  %v426_v47 = vld [vmem:[%s842_s2 + $0x60] sm:$0xff]  ;;  %v429_v51 = vld [vmem:[%s842_s2 + $0x78] sm:$0xff]  ;;  %v436_v52 = vadd.f32 %v605_v48, %v420_v44  ;;  %v434_v58 = vadd.f32 %v418_v46, %v236_v54  ;;  %v437_v63 = vadd.f32 %v606_v60, %v421_v50 }
 0x106   :  { %v444_v53 = vadd.f32 %v613_v49, %v428_v45  ;;  %v419_v56 = vld [vmem:[%s842_s2 + $0x28] sm:$0xff]  ;;  %v442_v59 = vadd.f32 %v426_v47, %v268_v55  ;;  %v445_v1 = vadd.f32 %v614_v61, %v429_v51 }
 0x107   :  { %v427_v57 = vld [vmem:[%s842_s2 + $0x68] sm:$0xff]  ;;  %v435_v5 = vadd.f32 %v419_v56, %v239_v2 }
 0x108   :  { %452 = vst [vmem:[%s843_s4 + $0x30] sm:$0xff] %v436_v52  ;;  %460 = vst [vmem:[%s843_s4 + $0x70] sm:$0xff] %v444_v53  ;;  %v443_v7 = vadd.f32 %v427_v57, %v271_v3 }
 0x109   :  { %450 = vst [vmem:[%s843_s4 + $0x20] sm:$0xff] %v434_v58  ;;  %458 = vst [vmem:[%s843_s4 + $0x60] sm:$0xff] %v442_v59 }
 0x10a   :  { %453 = vst [vmem:[%s843_s4 + $0x38] sm:$0xff] %v437_v63  ;;  %461 = vst [vmem:[%s843_s4 + $0x78] sm:$0xff] %v445_v1 }
 0x10b   :  { %451 = vst [vmem:[%s843_s4 + $0x28] sm:$0xff] %v435_v5  ;;  %459 = vst [vmem:[%s843_s4 + $0x68] sm:$0xff] %v443_v7 }

// kernel: hcf_forward.8
= control target key start
LH: loop header
LB: loop body
LE: loop exit
PB: predicated region body
PF: predicated region fallthrough
CT: control target
= control target key end

     0   :  { %s677_s1 = inlined_call_operand.vmem [shape: bf16[128,128], index: 1, kind: input, shape index: {}]   ;;  %s678_s0 = inlined_call_operand.vmem [shape: bf16[128,128], index: 0, kind: input, shape index: {}]   ;;  %s679_s2 = inlined_call_operand.vmem [shape: bf16[128,128], index: 2, kind: output, shape index: {}]  }
   0x1   :  { %v574_v0 = vld [vmem:[%s677_s1] sm:$0xff]   ;;  %v575_v1 = vld [vmem:[%s677_s1 + $0x8] sm:$0xff]   ;;  %v576_v2 = vld [vmem:[%s677_s1 + $0x10] sm:$0xff]  }
   0x2   :  { %526 = vmatprep.subr.bf16.mxu0 %v574_v0  ;;  %558 = vmatprep.subr.bf16.mxu1 %v574_v0  ;;  %v577_v3 = vld [vmem:[%s677_s1 + $0x18] sm:$0xff]   ;;  %v582_v4 = vld [vmem:[%s678_s0] sm:$0xff]   ;;  %v579_v7 = vld [vmem:[%s677_s1 + $0x28] sm:$0xff]  }
   0x3   :  { %527 = vmatpush3.bf16.msra.mxu0 %v574_v0  ;;  %566 = vmatpush3.bf16.msra.mxu1 %v574_v0  ;;  %v583_v5 = vld [vmem:[%s678_s0 + $0x20] sm:$0xff]   ;;  %v580_v8 = vld [vmem:[%s677_s1 + $0x30] sm:$0xff]   ;;  %v581_v9 = vld [vmem:[%s677_s1 + $0x38] sm:$0xff]  }
   0x4   :  { %528 = vmatprep.subr.bf16.mxu0 %v575_v1  ;;  %559 = vmatprep.subr.bf16.mxu1 %v575_v1  ;;  %v578_v6 = vld [vmem:[%s677_s1 + $0x20] sm:$0xff]   ;;  %v584_v10 = vld [vmem:[%s678_s0 + $0x8] sm:$0xff]   ;;  %v586_v12 = vld [vmem:[%s678_s0 + $0x10] sm:$0xff]  }
   0x5   :  { %542 = vmatprep.mubr.bf16.mxu0 %v582_v4  ;;  %550 = vmatprep.mubr.bf16.mxu1 %v583_v5  ;;  %v585_v11 = vld [vmem:[%s678_s0 + $0x28] sm:$0xff]   ;;  %v587_v13 = vld [vmem:[%s678_s0 + $0x30] sm:$0xff]   ;;  %v588_v14 = vld [vmem:[%s678_s0 + $0x18] sm:$0xff]  }
   0x6   :  { %v589_v15 = vld [vmem:[%s678_s0 + $0x38] sm:$0xff]  }
   0x7   :  { %529 = vmatpush3.bf16.msra.mxu0 %v575_v1  ;;  %567 = vmatpush3.bf16.msra.mxu1 %v575_v1 }
   0x8   :  { %530 = vmatprep.subr.bf16.mxu0 %v576_v2  ;;  %560 = vmatprep.subr.bf16.mxu1 %v576_v2 }
   0xb   :  { %531 = vmatpush3.bf16.msra.mxu0 %v576_v2  ;;  %568 = vmatpush3.bf16.msra.mxu1 %v576_v2 }
   0xc   :  { %532 = vmatprep.subr.bf16.mxu0 %v577_v3  ;;  %561 = vmatprep.subr.bf16.mxu1 %v577_v3 }
   0xf   :  { %533 = vmatpush3.bf16.msra.mxu0 %v577_v3  ;;  %569 = vmatpush3.bf16.msra.mxu1 %v577_v3 }
  0x10   :  { %534 = vmatprep.subr.bf16.mxu0 %v578_v6  ;;  %562 = vmatprep.subr.bf16.mxu1 %v578_v6 }
  0x13   :  { %535 = vmatpush3.bf16.msra.mxu0 %v578_v6  ;;  %570 = vmatpush3.bf16.msra.mxu1 %v578_v6 }
  0x14   :  { %536 = vmatprep.subr.bf16.mxu0 %v579_v7  ;;  %563 = vmatprep.subr.bf16.mxu1 %v579_v7 }
  0x17   :  { %537 = vmatpush3.bf16.msra.mxu0 %v579_v7  ;;  %571 = vmatpush3.bf16.msra.mxu1 %v579_v7 }
  0x18   :  { %538 = vmatprep.subr.bf16.mxu0 %v580_v8  ;;  %564 = vmatprep.subr.bf16.mxu1 %v580_v8 }
  0x1b   :  { %539 = vmatpush3.bf16.msra.mxu0 %v580_v8  ;;  %572 = vmatpush3.bf16.msra.mxu1 %v580_v8 }
  0x1c   :  { %540 = vmatprep.subr.bf16.mxu0 %v581_v9  ;;  %565 = vmatprep.subr.bf16.mxu1 %v581_v9 }
  0x1f   :  { %541 = vmatpush3.bf16.msra.mxu0 %v581_v9  ;;  %573 = vmatpush3.bf16.msra.mxu1 %v581_v9 }
  0x22   :  { %543 = vmatmul.mubr.bf16.vlgmr.msra.gmra.mrb[0].mxu0 %v584_v10  ;;  %551 = vmatmul.mubr.bf16.vlgmr.msra.gmra.mrb[0].mxu1 %v585_v11 }
  0x23   :  { %546 = vmatprep.mubr.bf16.mxu0 %v586_v12  ;;  %554 = vmatprep.mubr.bf16.mxu1 %v587_v13 }
  0x2a   :  { %547 = vmatmul.mubr.bf16.gmra.mrb[4].mxu0 %v588_v14  ;;  %555 = vmatmul.mubr.bf16.gmra.mrb[4].mxu1 %v589_v15 }
  0xf5   :  { %v544_v16 = vpop.f32.mrb[0].mxu0  ;;  %v552_v17 = vpop.f32.mrb[0].mxu1 }
  0xf6   :  { %v215_v18 = vpop.f32.mrb[1].mxu0  ;;  %v247_v19 = vpop.f32.mrb[1].mxu1 }
  0xf7   :  { %v545_v20 = vpop.f32.mrb[2].mxu0  ;;  %v553_v21 = vpop.f32.mrb[2].mxu1 }
  0xf8   :  { %v471_v22 = vpack.c.bf16 %v545_v20, %v544_v16  ;;  %v491_v23 = vpack.c.bf16 %v553_v21, %v552_v17  ;;  %v218_v24 = vpop.f32.mrb[3].mxu0  ;;  %v250_v25 = vpop.f32.mrb[3].mxu1 }
  0xf9   :  { %v466_v26 = vpack.c.bf16 %v218_v24, %v215_v18  ;;  %v486_v27 = vpack.c.bf16 %v250_v25, %v247_v19 }
  0xfa   :  { %503 = vst [vmem:[%s679_s2 + $0x8] sm:$0xff] %v471_v22   ;;  %507 = vst [vmem:[%s679_s2 + $0x28] sm:$0xff] %v491_v23  }
  0xfb   :  { %467 = vst [vmem:[%s679_s2] sm:$0xff] %v466_v26   ;;  %506 = vst [vmem:[%s679_s2 + $0x20] sm:$0xff] %v486_v27  }
  0xfd   :  { %v548_v28 = vpop.f32.mrb[4].mxu0  ;;  %v556_v29 = vpop.f32.mrb[4].mxu1 }
  0xfe   :  { %v231_v30 = vpop.f32.mrb[5].mxu0  ;;  %v263_v31 = vpop.f32.mrb[5].mxu1 }
  0xff   :  { %v549_v32 = vpop.f32.mrb[6].mxu0  ;;  %v557_v33 = vpop.f32.mrb[6].mxu1 }
 0x100   :  { %v481_v34 = vpack.c.bf16 %v549_v32, %v548_v28  ;;  %v501_v35 = vpack.c.bf16 %v557_v33, %v556_v29  ;;  %v234_v36 = vpop.f32.mrb[7].mxu0  ;;  %v266_v37 = vpop.f32.mrb[7].mxu1 }
 0x101   :  { %v476_v38 = vpack.c.bf16 %v234_v36, %v231_v30  ;;  %v496_v39 = vpack.c.bf16 %v266_v37, %v263_v31 }
 0x102   :  { %505 = vst [vmem:[%s679_s2 + $0x18] sm:$0xff] %v481_v34   ;;  %509 = vst [vmem:[%s679_s2 + $0x38] sm:$0xff] %v501_v35  }
 0x103   :  { %504 = vst [vmem:[%s679_s2 + $0x10] sm:$0xff] %v476_v38   ;;  %508 = vst [vmem:[%s679_s2 + $0x30] sm:$0xff] %v496_v39  }

// kernel: hcf_forward.11
= control target key start
LH: loop header
LB: loop body
LE: loop exit
PB: predicated region body
PF: predicated region fallthrough
CT: control target
= control target key end

     0   :  { %s894_s0 = inlined_call_operand.vmem [shape: bf16[128,128], index: 0, kind: input, shape index: {}]   ;;  %s895_s1 = inlined_call_operand.vmem [shape: bf16[128,128], index: 1, kind: input, shape index: {}]   ;;  %s896_s2 = inlined_call_operand.vmem [shape: f32[128,128], index: 2, kind: input, shape index: {}, may-alias: {2,4}]   ;;  %s897_s3 = inlined_call_operand.hbm [shape: bf16[128,128], index: 3, kind: output, shape index: {0}]   ;;  %s898_s4 = inlined_call_operand.vmem [shape: f32[128,128], index: 4, kind: output, shape index: {1}, may-alias: {2,4}]  }
   0x1   :  { %v663_v0 = vld [vmem:[%s895_s1] sm:$0xff]   ;;  %v664_v1 = vld [vmem:[%s895_s1 + $0x8] sm:$0xff]   ;;  %v665_v2 = vld [vmem:[%s895_s1 + $0x10] sm:$0xff]  }
   0x2   :  { %612 = vmatprep.subr.bf16.mxu0 %v663_v0  ;;  %644 = vmatprep.subr.bf16.mxu1 %v663_v0  ;;  %v666_v3 = vld [vmem:[%s895_s1 + $0x18] sm:$0xff]   ;;  %v671_v4 = vld [vmem:[%s894_s0] sm:$0xff]   ;;  %v668_v7 = vld [vmem:[%s895_s1 + $0x28] sm:$0xff]  }
   0x3   :  { %613 = vmatpush3.bf16.msra.mxu0 %v663_v0  ;;  %652 = vmatpush3.bf16.msra.mxu1 %v663_v0  ;;  %v672_v5 = vld [vmem:[%s894_s0 + $0x20] sm:$0xff]  }
   0x4   :  { %614 = vmatprep.subr.bf16.mxu0 %v664_v1  ;;  %645 = vmatprep.subr.bf16.mxu1 %v664_v1  ;;  %v667_v6 = vld [vmem:[%s895_s1 + $0x20] sm:$0xff]  }
   0x5   :  { %628 = vmatprep.mubr.bf16.mxu0 %v671_v4  ;;  %636 = vmatprep.mubr.bf16.mxu1 %v672_v5 }
   0x7   :  { %615 = vmatpush3.bf16.msra.mxu0 %v664_v1  ;;  %653 = vmatpush3.bf16.msra.mxu1 %v664_v1 }
   0x8   :  { %616 = vmatprep.subr.bf16.mxu0 %v665_v2  ;;  %646 = vmatprep.subr.bf16.mxu1 %v665_v2 }
   0xb   :  { %617 = vmatpush3.bf16.msra.mxu0 %v665_v2  ;;  %654 = vmatpush3.bf16.msra.mxu1 %v665_v2 }
   0xc   :  { %618 = vmatprep.subr.bf16.mxu0 %v666_v3  ;;  %647 = vmatprep.subr.bf16.mxu1 %v666_v3 }
   0xf   :  { %619 = vmatpush3.bf16.msra.mxu0 %v666_v3  ;;  %655 = vmatpush3.bf16.msra.mxu1 %v666_v3 }
  0x10   :  { %620 = vmatprep.subr.bf16.mxu0 %v667_v6  ;;  %648 = vmatprep.subr.bf16.mxu1 %v667_v6 }
  0x11   :  { %10 = vsyncpa [#allocation4], 0  ;;  %v669_v8 = vld [vmem:[%s895_s1 + $0x30] sm:$0xff]   ;;  %v670_v9 = vld [vmem:[%s895_s1 + $0x38] sm:$0xff]   ;;  %s703_s7 = smov [#allocation3]  }
  0x12   :  { %v673_v10 = vld [vmem:[%s894_s0 + $0x8] sm:$0xff]   ;;  %v675_v12 = vld [vmem:[%s894_s0 + $0x10] sm:$0xff]   ;;  %v677_v14 = vld [vmem:[%s894_s0 + $0x18] sm:$0xff]   ;;  %s484_s8 = sshll.u32 %s703_s7, 4  ;;  %s851_s8 = int_to_ptr.vmem [resolvable:$true] %s484_s8 }
  0x13   :  { %621 = vmatpush3.bf16.msra.mxu0 %v667_v6  ;;  %656 = vmatpush3.bf16.msra.mxu1 %v667_v6  ;;  %v674_v11 = vld [vmem:[%s894_s0 + $0x28] sm:$0xff]   ;;  %v676_v13 = vld [vmem:[%s894_s0 + $0x30] sm:$0xff]   ;;  %v678_v15 = vld [vmem:[%s894_s0 + $0x38] sm:$0xff]   ;;  %s679_s25 = scalar_lea.vmem %s851_s8, 1024  ;;  %p684_p1 = scmp.lt.s32.totalorder %s851_s8, %s851_s8 }
  0x14   :  { %622 = vmatprep.subr.bf16.mxu0 %v668_v7  ;;  %649 = vmatprep.subr.bf16.mxu1 %v668_v7  ;;  %v417_v16 = vld [vmem:[%s896_s2 + $0x10] sm:$0xff]  ;;  %v415_v18 = vld [vmem:[%s896_s2] sm:$0xff]  ;;  %v418_v22 = vld [vmem:[%s896_s2 + $0x18] sm:$0xff]  ;;  %p680_p0 = scmp.ne.s32.totalorder %s851_s8, %s679_s25  ;;  %p685_p2 = scmp.lt.s32.totalorder %s679_s25, %s679_s25 }
  0x15   :  { %v425_v17 = vld [vmem:[%s896_s2 + $0x50] sm:$0xff]  ;;  %v423_v19 = vld [vmem:[%s896_s2 + $0x40] sm:$0xff]  ;;  %v426_v27 = vld [vmem:[%s896_s2 + $0x58] sm:$0xff] }
  0x16   :  { %v416_v32 = vld [vmem:[%s896_s2 + $0x8] sm:$0xff]  ;;  %p686_p3 = por %p685_p2, %p684_p1 }
  0x17   :  { %623 = vmatpush3.bf16.msra.mxu0 %v668_v7  ;;  %657 = vmatpush3.bf16.msra.mxu1 %v668_v7  ;;  %v424_v33 = vld [vmem:[%s896_s2 + $0x48] sm:$0xff] }
  0x18   :  { %624 = vmatprep.subr.bf16.mxu0 %v669_v8  ;;  %650 = vmatprep.subr.bf16.mxu1 %v669_v8  ;;  %p687_p4 = pnand %p686_p3, %p680_p0 }
  0x1b   :  { %625 = vmatpush3.bf16.msra.mxu0 %v669_v8  ;;  %658 = vmatpush3.bf16.msra.mxu1 %v669_v8 }
  0x1c   :  { %626 = vmatprep.subr.bf16.mxu0 %v670_v9  ;;  %651 = vmatprep.subr.bf16.mxu1 %v670_v9 }
  0x1f   :  { %627 = vmatpush3.bf16.msra.mxu0 %v670_v9  ;;  %659 = vmatpush3.bf16.msra.mxu1 %v670_v9 }
  0x22   :  { %629 = vmatmul.mubr.bf16.vlgmr.msra.gmra.mrb[0].mxu0 %v673_v10  ;;  %637 = vmatmul.mubr.bf16.vlgmr.msra.gmra.mrb[0].mxu1 %v674_v11 }
  0x23   :  { %632 = vmatprep.mubr.bf16.mxu0 %v675_v12  ;;  %640 = vmatprep.mubr.bf16.mxu1 %v676_v13 }
  0x2a   :  { %633 = vmatmul.mubr.bf16.gmra.mrb[4].mxu0 %v677_v14  ;;  %641 = vmatmul.mubr.bf16.gmra.mrb[4].mxu1 %v678_v15 }
  0xf5   :  { %v630_v20 = vpop.f32.mrb[0].mxu0  ;;  %v638_v21 = vpop.f32.mrb[0].mxu1 }
  0xf6   :  { %v433_v23 = vadd.f32 %v630_v20, %v417_v16  ;;  %v441_v24 = vadd.f32 %v638_v21, %v425_v17  ;;  %v221_v25 = vpop.f32.mrb[1].mxu0  ;;  %v253_v26 = vpop.f32.mrb[1].mxu1 }
  0xf7   :  { %v431_v28 = vadd.f32 %v415_v18, %v221_v25  ;;  %v439_v29 = vadd.f32 %v423_v19, %v253_v26  ;;  %v631_v30 = vpop.f32.mrb[2].mxu0  ;;  %v639_v31 = vpop.f32.mrb[2].mxu1 }
  0xf8   :  { %v449_v34 = vmul.f32 0.33333334, %v433_v23  ;;  %v457_v35 = vmul.f32 0.33333334, %v441_v24  ;;  %v557_v36 = vpack.c.bf16 %v631_v30, %v630_v20  ;;  %v434_v37 = vadd.f32 %v631_v30, %v418_v22  ;;  %v224_v38 = vpop.f32.mrb[3].mxu0  ;;  %v256_v39 = vpop.f32.mrb[3].mxu1 }
  0xf9   :  { %v447_v40 = vmul.f32 0.33333334, %v431_v28  ;;  %v455_v41 = vmul.f32 0.33333334, %v439_v29  ;;  %v577_v42 = vpack.c.bf16 %v639_v31, %v638_v21  ;;  %v442_v43 = vadd.f32 %v639_v31, %v426_v27 }
  0xfa   :  { %465 = vst [vmem:[%s898_s4 + $0x10] sm:$0xff] %v449_v34  ;;  %473 = vst [vmem:[%s898_s4 + $0x50] sm:$0xff] %v457_v35  ;;  %v450_v44 = vmul.f32 0.33333334, %v434_v37  ;;  %v552_v45 = vpack.c.bf16 %v224_v38, %v221_v25  ;;  %v432_v46 = vadd.f32 %v416_v32, %v224_v38  ;;  %v572_v47 = vpack.c.bf16 %v256_v39, %v253_v26 }
  0xfb   :  { %589 = vst [vmem:[#allocation3 + $0x8] sm:$0xff] %v557_v36   ;;  %463 = vst [vmem:[%s898_s4] sm:$0xff] %v447_v40  ;;  %v458_v48 = vmul.f32 0.33333334, %v442_v43  ;;  %v440_v49 = vadd.f32 %v424_v33, %v256_v39 }
  0xfc   :  { %471 = vst [vmem:[%s898_s4 + $0x40] sm:$0xff] %v455_v41  ;;  %593 = vst [vmem:[#allocation3 + $0x28] sm:$0xff] %v577_v42   ;;  %v448_v52 = vmul.f32 0.33333334, %v432_v46 }
  0xfd   :  { %553 = vst [vmem:[#allocation3] sm:$0xff] %v552_v45   ;;  %592 = vst [vmem:[#allocation3 + $0x20] sm:$0xff] %v572_v47   ;;  %v456_v55 = vmul.f32 0.33333334, %v440_v49  ;;  %v634_v56 = vpop.f32.mrb[4].mxu0  ;;  %v642_v57 = vpop.f32.mrb[4].mxu1 }
  0xfe   :  { %v237_v61 = vpop.f32.mrb[5].mxu0  ;;  %v269_v62 = vpop.f32.mrb[5].mxu1 }
  0xff   :  { %v635_v2 = vpop.f32.mrb[6].mxu0  ;;  %v643_v3 = vpop.f32.mrb[6].mxu1 }
 0x100   :  { %v567_v8 = vpack.c.bf16 %v635_v2, %v634_v56  ;;  %v240_v10 = vpop.f32.mrb[7].mxu0  ;;  %v272_v11 = vpop.f32.mrb[7].mxu1  ;;  %v587_v14 = vpack.c.bf16 %v643_v3, %v642_v57 }
 0x101   :  { %v562_v17 = vpack.c.bf16 %v240_v10, %v237_v61  ;;  %v582_v19 = vpack.c.bf16 %v272_v11, %v269_v62 }
 0x102   :  { %591 = vst [vmem:[#allocation3 + $0x18] sm:$0xff] %v567_v8   ;;  %595 = vst [vmem:[#allocation3 + $0x38] sm:$0xff] %v587_v14  }
 0x103   :  { %v421_v50 = vld [vmem:[%s896_s2 + $0x30] sm:$0xff]  ;;  %590 = vst [vmem:[#allocation3 + $0x10] sm:$0xff] %v562_v17   ;;  %594 = vst [vmem:[#allocation3 + $0x30] sm:$0xff] %v582_v19  }
 0x104   :  { %v429_v51 = vld [vmem:[%s896_s2 + $0x70] sm:$0xff]  ;;  %v437_v59 = vadd.f32 %v634_v56, %v421_v50 }
 0x105   :  { %466 = vst [vmem:[%s898_s4 + $0x18] sm:$0xff] %v450_v44  ;;  %v445_v60 = vadd.f32 %v642_v57, %v429_v51 }
 0x106   :  { %v453_v6 = vmul.f32 0.33333334, %v437_v59 }
 0x107   :  { %v461_v7 = vmul.f32 0.33333334, %v445_v60 }
 0x10c   :  { %v419_v53 = vld [vmem:[%s896_s2 + $0x20] sm:$0xff] }
 0x10d   :  { %v427_v54 = vld [vmem:[%s896_s2 + $0x60] sm:$0xff]  ;;  %v435_v0 = vadd.f32 %v419_v53, %v237_v61 }
 0x10e   :  { %474 = vst [vmem:[%s898_s4 + $0x58] sm:$0xff] %v458_v48  ;;  %v443_v1 = vadd.f32 %v427_v54, %v269_v62 }
 0x10f   :  { %v451_v12 = vmul.f32 0.33333334, %v435_v0 }
 0x110   :  { %v459_v13 = vmul.f32 0.33333334, %v443_v1 }
 0x115   :  { %v422_v58 = vld [vmem:[%s896_s2 + $0x38] sm:$0xff] }
 0x116   :  { %464 = vst [vmem:[%s898_s4 + $0x8] sm:$0xff] %v448_v52  ;;  %v438_v9 = vadd.f32 %v635_v2, %v422_v58 }
 0x118   :  { %v454_v16 = vmul.f32 0.33333334, %v438_v9 }
 0x11d   :  { %v430_v63 = vld [vmem:[%s896_s2 + $0x78] sm:$0xff] }
 0x11e   :  { %472 = vst [vmem:[%s898_s4 + $0x48] sm:$0xff] %v456_v55  ;;  %v446_v15 = vadd.f32 %v643_v3, %v430_v63 }
 0x120   :  { %v462_v20 = vmul.f32 0.33333334, %v446_v15 }
 0x125   :  { %v420_v4 = vld [vmem:[%s896_s2 + $0x28] sm:$0xff] }
 0x126   :  { %v428_v5 = vld [vmem:[%s896_s2 + $0x68] sm:$0xff]  ;;  %v436_v18 = vadd.f32 %v420_v4, %v240_v10 }
 0x127   :  { %469 = vst [vmem:[%s898_s4 + $0x30] sm:$0xff] %v453_v6  ;;  %477 = vst [vmem:[%s898_s4 + $0x70] sm:$0xff] %v461_v7  ;;  %v444_v21 = vadd.f32 %v428_v5, %v272_v11 }
 0x128   :  { %467 = vst [vmem:[%s898_s4 + $0x20] sm:$0xff] %v451_v12  ;;  %475 = vst [vmem:[%s898_s4 + $0x60] sm:$0xff] %v459_v13  ;;  %v452_v22 = vmul.f32 0.33333334, %v436_v18 }
 0x129   :  { %470 = vst [vmem:[%s898_s4 + $0x38] sm:$0xff] %v454_v16  ;;  %478 = vst [vmem:[%s898_s4 + $0x78] sm:$0xff] %v462_v20  ;;  %v460_v23 = vmul.f32 0.33333334, %v444_v21 }
 0x12a   :  { %690 = shalt.err (!%p687_p4)
}
 0x12b   :  { %s691_s0 = scalar_lea.hbm %s897_s3, 1024 }
 0x12c   :  { %p692_p5 = scmp.ne.s32.totalorder %s897_s3, %s691_s0  ;;  %p695_p6 = scmp.lt.u32.totalorder %s691_s0, %s897_s3 }
 0x12e   :  { %p697_p7 = pnand %p695_p6, %p692_p5 }
 0x130   :  { %700 = shalt.err (!%p697_p7)
}
 0x131   :  { %s704_s6 = smov 64   ;;  %s705_s7 = smov 4   ;;  %468 = vst [vmem:[%s898_s4 + $0x28] sm:$0xff] %v452_v22  ;;  %476 = vst [vmem:[%s898_s4 + $0x68] sm:$0xff] %v460_v23 }
 0x132   :  { %490 = dma.vmem_to_hbm [thread:$0]  %s851_s8, 1024, %s897_s3, [#allocation4], %s704_s6, %s704_s6, %s705_s7  }
 0x133   :  { %701 = dma.done.wait [#allocation4], 1024  }
 0x134   :  { %702 = vsyncadd [#allocation4], 4294966272 }
 0x135   :  { %498 = vsyncpa [#allocation4], 1 }

</bundles_post_ra>
